<compile_context>
chip_gen: v5e
topology: v5e:2x2
jax: 0.10.0
libtpu: 0.0.40
codegen_flags: <defaults>
</compile_context>

<pallas_src>
import functools

import jax
import jax.numpy as jnp
from jax.experimental import pallas as pl
from jax.experimental.pallas import tpu as pltpu


def _round_up(x, m):
    return (x + m - 1) // m * m


def _w2_scaled(se_ref, w1t_ref, b1_ref, w2_ref):
    # Gate: sigmoid(w1 @ se + b1).  Tiny [1,C_in]x[C_in,C_mid] matmul; the
    # sigmoid itself stays in f32 (v5e has no bf16 VPU/EUP).
    s = jnp.dot(se_ref[...], w1t_ref[...],
                preferred_element_type=jnp.float32) + b1_ref[...]        # [1, C_mid]
    gate = jax.nn.sigmoid(s)                                             # sigmoid26, f32
    # Fold the gate into w2's columns (exact fold); bf16 multiply so a
    # bf16-stored w2 never round-trips through f32.
    return w2_ref[...].astype(jnp.bfloat16) * gate.astype(jnp.bfloat16)  # [C_out, C_mid]


def _se_kernel_hoisted(se_ref, w1t_ref, b1_ref, w2_ref, x_ref, out_ref, w2s_ref):
    # Gate + w2 scaling computed once (grid step 0) into a persistent VMEM
    # scratch; requires dimension_semantics=("arbitrary",).
    @pl.when(pl.program_id(0) == 0)
    def _():
        w2s_ref[...] = _w2_scaled(se_ref, w1t_ref, b1_ref, w2_ref)

    x_bf16 = x_ref[...].astype(jnp.bfloat16)                             # [C_mid, TILE]
    out_ref[...] = jnp.dot(w2s_ref[...], x_bf16,
                           preferred_element_type=jnp.float32).astype(out_ref.dtype)


def _se_kernel_recompute(se_ref, w1t_ref, b1_ref, w2_ref, x_ref, out_ref):
    # Per-tile gate recompute keeps every grid step independent so the spatial
    # axis can be sharded across TensorCores ("parallel"; v7x megacore).
    w2s = _w2_scaled(se_ref, w1t_ref, b1_ref, w2_ref)
    x_bf16 = x_ref[...].astype(jnp.bfloat16)
    out_ref[...] = jnp.dot(w2s, x_bf16,
                           preferred_element_type=jnp.float32).astype(out_ref.dtype)


def se_block(x405, x408, w1, b1, w2, *, tile_hw=None, megacore=False, out_dtype=None):
    """Squeeze-excitation tail (conv1x1 -> sigmoid -> mul -> conv1x1, no bias).

    x405: [1, C_mid, H, W]   feature map (f32 or bf16)
    x408: [1, C_in, 1, 1]    squeezed SE vector
    w1:   [C_mid, C_in]      conv2d130 weight;  b1: [C_mid] bias
    w2:   [C_out, C_mid]     conv2d131 weight (ideally stored once in bf16)

    tile_hw=None -> full-extent spatial block, grid=(1,): no padding, no output
    slice (best for the real 14x14 case on all generations).  For large HW pass
    tile_hw>=512.  megacore=True -> per-tile gate recompute + "parallel" grid
    (use only on v7x, where 2 TensorCores can split the spatial axis).
    """
    _, c_mid, h, w = x405.shape
    c_in = x408.shape[1]
    c_out = w2.shape[0]
    hw = h * w
    out_dtype = out_dtype or x405.dtype

    x_flat = x405.reshape(c_mid, hw)                     # [C_mid, HW] (free reshape)
    se_row = x408.reshape(1, c_in).astype(jnp.float32)   # gate math stays f32
    w1t = jnp.transpose(w1).astype(jnp.float32)          # [C_in, C_mid]
    b1_row = b1.reshape(1, c_mid).astype(jnp.float32)

    if tile_hw is None or tile_hw >= hw:
        # Full-extent block: (8,128) rule satisfied by full array dims; only
        # cost is a masked vst on the tail vreg -- no pad/slice HBM round trip.
        tile = hw
        hw_pad = hw
    else:
        tile = max(128, _round_up(tile_hw, 128))         # lane-dense tiles
        hw_pad = _round_up(hw, tile)
        if hw_pad != hw:
            # Zero columns produce zero outputs (2nd conv is bias-free) and are
            # sliced off below.
            x_flat = jnp.pad(x_flat, ((0, 0), (0, hw_pad - hw)))
    grid = (hw_pad // tile,)

    if megacore:
        kernel = _se_kernel_recompute
        scratch_shapes = []
        semantics = ("parallel",)
    else:
        kernel = _se_kernel_hoisted
        scratch_shapes = [pltpu.VMEM((c_out, c_mid), jnp.bfloat16)]
        semantics = ("arbitrary",)

    cost = pl.CostEstimate(
        flops=2 * c_out * c_mid * hw_pad + 2 * c_in * c_mid + c_out * c_mid,
        transcendentals=c_mid,
        bytes_accessed=(x_flat.size * x_flat.dtype.itemsize
                        + w2.size * w2.dtype.itemsize
                        + w1t.size * 4 + (c_mid + c_in) * 4
                        + c_out * hw_pad * jnp.dtype(out_dtype).itemsize))

    out_flat = pl.pallas_call(
        kernel,
        out_shape=jax.ShapeDtypeStruct((c_out, hw_pad), out_dtype),
        grid=grid,
        in_specs=[
            pl.BlockSpec((1, c_in), lambda i: (0, 0)),          # se vector (resident)
            pl.BlockSpec((c_in, c_mid), lambda i: (0, 0)),      # w1^T (resident)
            pl.BlockSpec((1, c_mid), lambda i: (0, 0)),         # b1 (resident)
            pl.BlockSpec((c_out, c_mid), lambda i: (0, 0)),     # w2 (resident)
            pl.BlockSpec((c_mid, tile), lambda i: (0, i)),      # x tile (pipelined)
        ],
        out_specs=pl.BlockSpec((c_out, tile), lambda i: (0, i)),
        scratch_shapes=scratch_shapes,
        compiler_params=pltpu.CompilerParams(dimension_semantics=semantics),
        cost_estimate=cost,
    )(se_row, w1t, b1_row, w2, x_flat)

    if hw_pad != hw:
        out_flat = out_flat[:, :hw]
    return out_flat.reshape(1, c_out, h, w)


def _reference(x405, x408, w1, b1, w2):
    # Pure-JAX f32 reference of the PyTorch forward (1x1 convs as einsums).
    s = jnp.einsum('oc,bcij->boij', w1, x408) + b1[None, :, None, None]
    g = jax.nn.sigmoid(s)
    y = g * x405
    return jnp.einsum('oc,bchw->bohw', w2, y)


if __name__ == "__main__":
    # Small shapes consistent with the module's structure
    # (real module: 40 -> 960 SE expand, 960 -> 160 projection, 14x14 spatial).
    C_IN, C_MID, C_OUT = 8, 64, 32

    key = jax.random.PRNGKey(0)
    k1, k2, k3, k4, k5, k6 = jax.random.split(key, 6)

    w1 = jax.random.normal(k3, (C_MID, C_IN), dtype=jnp.float32) * 0.1
    b1 = jax.random.normal(k4, (C_MID,), dtype=jnp.float32) * 0.1
    w2 = jax.random.normal(k5, (C_OUT, C_MID), dtype=jnp.float32) * 0.1
    w2_bf16 = w2.astype(jnp.bfloat16)   # params stored in bf16 once (perf review)

    # --- Test A: real-module-shaped case (14x14) -> full-extent block, grid=(1,)
    H = W = 14
    x405 = jax.random.normal(k1, (1, C_MID, H, W), dtype=jnp.float32)
    x408 = jax.random.normal(k2, (1, C_IN, 1, 1), dtype=jnp.float32)

    run_full = jax.jit(se_block)
    out_a = jax.block_until_ready(run_full(x405, x408, w1, b1, w2_bf16))
    ref_a = _reference(x405, x408, w1, b1, w2)
    assert out_a.shape == (1, C_OUT, H, W)
    err_a = float(jnp.max(jnp.abs(out_a - ref_a)))
    assert jnp.allclose(out_a, ref_a, atol=3e-2, rtol=3e-2), err_a

    # --- Test B: larger spatial (32x32) -> pipelined tiles, hoisted gate scratch
    H2 = W2 = 32
    x405b = jax.random.normal(k6, (1, C_MID, H2, W2), dtype=jnp.float32)
    run_tiled = jax.jit(functools.partial(se_block, tile_hw=128))
    out_b = jax.block_until_ready(run_tiled(x405b, x408, w1, b1, w2_bf16))
    ref_b = _reference(x405b, x408, w1, b1, w2)
    err_b = float(jnp.max(jnp.abs(out_b - ref_b)))
    assert jnp.allclose(out_b, ref_b, atol=3e-2, rtol=3e-2), err_b

    # --- Test C: megacore split path (parallel grid, per-tile gate, lane padding)
    run_mc = jax.jit(functools.partial(se_block, tile_hw=128, megacore=True))
    out_c = jax.block_until_ready(run_mc(x405, x408, w1, b1, w2_bf16))
    err_c = float(jnp.max(jnp.abs(out_c - ref_a)))
    assert jnp.allclose(out_c, ref_a, atol=3e-2, rtol=3e-2), err_c

    print("KERNEL_OK")
</pallas_src>

<mosaic_0001>
module attributes {stable_mosaic.version = 11 : i64} {
  func.func @_se_kernel_hoisted(%arg0: i32, %arg1: memref<1x8xf32, #tpu.memory_space<vmem>>, %arg2: memref<8x64xf32, #tpu.memory_space<vmem>>, %arg3: memref<1x64xf32, #tpu.memory_space<vmem>>, %arg4: memref<32x64xbf16, #tpu.memory_space<vmem>>, %arg5: memref<64x196xf32, #tpu.memory_space<vmem>>, %arg6: memref<32x196xf32, #tpu.memory_space<vmem>>, %arg7: memref<32x64xbf16, #tpu.memory_space<vmem>>) attributes {dimension_semantics = [#tpu.dimension_semantics<arbitrary>], iteration_bounds = array<i64: 1>, scalar_prefetch = 0 : i64, scratch_operands = 1 : i64, tpu.core_type = #tpu.core_type<tc>, window_params = [{pipeline_mode = #tpu.pipeline_mode<synchronous>, transform_indices = @transform_0, window_bounds = array<i64: 1, 8>}, {pipeline_mode = #tpu.pipeline_mode<synchronous>, transform_indices = @transform_1, window_bounds = array<i64: 8, 64>}, {pipeline_mode = #tpu.pipeline_mode<synchronous>, transform_indices = @transform_2, window_bounds = array<i64: 1, 64>}, {pipeline_mode = #tpu.pipeline_mode<synchronous>, transform_indices = @transform_3, window_bounds = array<i64: 32, 64>}, {transform_indices = @transform_4, window_bounds = array<i64: 64, 196>}, {transform_indices = @transform_5, window_bounds = array<i64: 32, 196>}]} {
    %c0_i32 = arith.constant 0 : i32
    %0 = arith.cmpi eq, %arg0, %c0_i32 : i32
    %1 = arith.extui %0 : i1 to i32
    %c0_i32_0 = arith.constant 0 : i32
    %2 = arith.cmpi ne, %1, %c0_i32_0 : i32
    scf.if %2 {
      %c0_6 = arith.constant 0 : index
      %c0_7 = arith.constant 0 : index
      %8 = vector.load %arg1[%c0_6, %c0_7] : memref<1x8xf32, #tpu.memory_space<vmem>>, vector<1x8xf32>
      %c0_8 = arith.constant 0 : index
      %c0_9 = arith.constant 0 : index
      %9 = vector.load %arg2[%c0_8, %c0_9] : memref<8x64xf32, #tpu.memory_space<vmem>>, vector<8x64xf32>
      %cst_10 = arith.constant dense<0.000000e+00> : vector<1x64xf32>
      %10 = tpu.matmul %8, %9, %cst_10 {dimension_numbers = #tpu.dot_dimension_numbers<[1], [0], [0], [1], [0, 0, 1, 1], [], []>} : vector<1x8xf32>, vector<8x64xf32>, vector<1x64xf32> -> vector<1x64xf32>
      %c0_11 = arith.constant 0 : index
      %c0_12 = arith.constant 0 : index
      %11 = vector.load %arg3[%c0_11, %c0_12] : memref<1x64xf32, #tpu.memory_space<vmem>>, vector<1x64xf32>
      %12 = arith.addf %10, %11 : vector<1x64xf32>
      %13 = arith.negf %12 : vector<1x64xf32>
      %14 = math.exp %13 : vector<1x64xf32>
      %cst_13 = arith.constant 1.000000e+00 : f32
      %15 = vector.broadcast %cst_13 : f32 to vector<1x64xf32>
      %16 = arith.addf %15, %14 : vector<1x64xf32>
      %17 = arith.divf %15, %16 : vector<1x64xf32>
      %c0_14 = arith.constant 0 : index
      %c0_15 = arith.constant 0 : index
      %18 = vector.load %arg4[%c0_14, %c0_15] : memref<32x64xbf16, #tpu.memory_space<vmem>>, vector<32x64xbf16>
      %19 = arith.truncf %17 : vector<1x64xf32> to vector<1x64xbf16>
      %20 = vector.broadcast %19 : vector<1x64xbf16> to vector<32x64xbf16>
      %21 = arith.mulf %18, %20 : vector<32x64xbf16>
      %c0_16 = arith.constant 0 : index
      %c0_17 = arith.constant 0 : index
      %22 = vector.load %arg7[%c0_16, %c0_17] : memref<32x64xbf16, #tpu.memory_space<vmem>>, vector<32x64xbf16>
      tpu.vector_store %arg7[%c0_16, %c0_17], %21 {strides = array<i32>} : memref<32x64xbf16, #tpu.memory_space<vmem>>, vector<32x64xbf16>,
    } else {
    }
    %c0 = arith.constant 0 : index
    %c0_1 = arith.constant 0 : index
    %3 = vector.load %arg5[%c0, %c0_1] : memref<64x196xf32, #tpu.memory_space<vmem>>, vector<64x196xf32>
    %4 = arith.truncf %3 : vector<64x196xf32> to vector<64x196xbf16>
    %c0_2 = arith.constant 0 : index
    %c0_3 = arith.constant 0 : index
    %5 = vector.load %arg7[%c0_2, %c0_3] : memref<32x64xbf16, #tpu.memory_space<vmem>>, vector<32x64xbf16>
    %cst = arith.constant dense<0.000000e+00> : vector<32x196xf32>
    %6 = tpu.matmul %5, %4, %cst {dimension_numbers = #tpu.dot_dimension_numbers<[1], [0], [0], [1], [0, 0, 1, 1], [], []>} : vector<32x64xbf16>, vector<64x196xbf16>, vector<32x196xf32> -> vector<32x196xf32>
    %c0_4 = arith.constant 0 : index
    %c0_5 = arith.constant 0 : index
    %7 = vector.load %arg6[%c0_4, %c0_5] : memref<32x196xf32, #tpu.memory_space<vmem>>, vector<32x196xf32>
    tpu.vector_store %arg6[%c0_4, %c0_5], %6 {strides = array<i32>} : memref<32x196xf32, #tpu.memory_space<vmem>>, vector<32x196xf32>,
    return
  }
  func.func @transform_0(%arg0: i32) -> (i32, i32) {
    %c0_i32 = arith.constant 0 : i32
    %c0_i32_0 = arith.constant 0 : i32
    %c0_i32_1 = arith.constant 0 : i32
    return %c0_i32, %c0_i32_0 : i32, i32
  }
  func.func @transform_1(%arg0: i32) -> (i32, i32) {
    %c0_i32 = arith.constant 0 : i32
    %c0_i32_0 = arith.constant 0 : i32
    %c0_i32_1 = arith.constant 0 : i32
    return %c0_i32, %c0_i32_0 : i32, i32
  }
  func.func @transform_2(%arg0: i32) -> (i32, i32) {
    %c0_i32 = arith.constant 0 : i32
    %c0_i32_0 = arith.constant 0 : i32
    %c0_i32_1 = arith.constant 0 : i32
    return %c0_i32, %c0_i32_0 : i32, i32
  }
  func.func @transform_3(%arg0: i32) -> (i32, i32) {
    %c0_i32 = arith.constant 0 : i32
    %c0_i32_0 = arith.constant 0 : i32
    %c0_i32_1 = arith.constant 0 : i32
    return %c0_i32, %c0_i32_0 : i32, i32
  }
  func.func @transform_4(%arg0: i32) -> (i32, i32) {
    %c0_i32 = arith.constant 0 : i32
    %c0_i32_0 = arith.constant 0 : i32
    return %c0_i32, %arg0 : i32, i32
  }
  func.func @transform_5(%arg0: i32) -> (i32, i32) {
    %c0_i32 = arith.constant 0 : i32
    %c0_i32_0 = arith.constant 0 : i32
    return %c0_i32, %arg0 : i32, i32
  }
}

</mosaic_0001>

<bundles_post_ra>
// kernel: se_block.1
= control target key start
LH: loop header
LB: loop body
LE: loop exit
PB: predicated region body
PF: predicated region fallthrough
CT: control target
= control target key end

     0   :  { %vm28_vm0 = vcmask 64512   ;;  %vm93_vm5 = vcmask 519168   ;;  %vm136_vm6 = vcmask 523264   ;;  %vm182_vm7 = vcmask 556032   ;;  %s352_s1 = inlined_call_operand.vmem [shape: f32[8,64], index: 1, kind: input, shape index: {}]   ;;  %s353_s0 = inlined_call_operand.vmem [shape: f32[1,8], index: 0, kind: input, shape index: {}]   ;;  %s354_s2 = inlined_call_operand.vmem [shape: f32[1,64], index: 2, kind: input, shape index: {}]   ;;  %s355_s4 = inlined_call_operand.vmem [shape: f32[64,196], index: 4, kind: input, shape index: {}]   ;;  %s356_s3 = inlined_call_operand.vmem [shape: bf16[32,64], index: 3, kind: input, shape index: {}]   ;;  %s357_s5 = inlined_call_operand.vmem [shape: f32[32,196], index: 5, kind: output, shape index: {}]  }
   0x1   :  { %v26_v0 = vld [vmem:[%s352_s1] sm:$0xff]  ;;  %v112_v7 = vld [vmem:[%s355_s4 + $0x70] sm:$0xff]  ;;  %v111_v8 = vld [vmem:[%s355_s4 + $0x68] sm:$0xff] }
   0x2   :  { %v25_v1 = vld [vmem:[%s353_s0] sm:$0x1]  ;;  %47 = vmatpush.msra.mxu0 %v26_v0  ;;  %v113_v10 = vld [vmem:[%s355_s4 + $0x78] sm:$0xff]  ;;  %v108_v13 = vld [vmem:[%s355_s4 + $0x50] sm:$0xff] }
   0x3   :  { %194 = vmatmul.msk.f32.vlgmr.msra.gmra.mxu0 %vm28_vm0, %v25_v1  ;;  %v27_v2 = vld [vmem:[%s354_s2] sm:$0x1]  ;;  %v121_v11 = vpack.c.bf16 %v113_v10, %v111_v8  ;;  %v107_v14 = vld [vmem:[%s355_s4 + $0x48] sm:$0xff]  ;;  %v109_v16 = vld [vmem:[%s355_s4 + $0x58] sm:$0xff] }
   0x4   :  { %v110_v6 = vld [vmem:[%s355_s4 + $0x60] sm:$0xff]  ;;  %v119_v18 = vpack.c.bf16 %v109_v16, %v107_v14  ;;  %v104_v21 = vld [vmem:[%s355_s4 + $0x30] sm:$0xff]  ;;  %v103_v22 = vld [vmem:[%s355_s4 + $0x28] sm:$0xff] }
   0x5   :  { %v120_v9 = vpack.c.bf16 %v112_v7, %v110_v6  ;;  %166 = vmatpush.bf16.msrb.mxu0 %v121_v11  ;;  %223 = vmatpush.bf16.msra.mxu2 %v121_v11  ;;  %v106_v12 = vld [vmem:[%s355_s4 + $0x40] sm:$0xff]  ;;  %v105_v23 = vld [vmem:[%s355_s4 + $0x38] sm:$0xff]  ;;  %v100_v25 = vld [vmem:[%s355_s4 + $0x10] sm:$0xff] }
   0x6   :  { %v118_v15 = vpack.c.bf16 %v108_v13, %v106_v12  ;;  %v102_v20 = vld [vmem:[%s355_s4 + $0x20] sm:$0xff]  ;;  %v117_v27 = vpack.c.bf16 %v105_v23, %v103_v22  ;;  %v99_v28 = vld [vmem:[%s355_s4 + $0x8] sm:$0xff]  ;;  %v101_v29 = vld [vmem:[%s355_s4 + $0x18] sm:$0xff] }
   0x7   :  { %147 = vmatpush.bf16.msra.mxu1 %v120_v9  ;;  %219 = vmatpush.bf16.msra.mxu3 %v120_v9  ;;  %v98_v24 = vld [vmem:[%s355_s4] sm:$0xff]  ;;  %v116_v26 = vpack.c.bf16 %v104_v21, %v102_v20  ;;  %v115_v31 = vpack.c.bf16 %v101_v29, %v99_v28  ;;  %v218_v44 = vld [vmem:[%s356_s3 + $0x8] sm:$0xff]  }
   0x8   :  { %v114_v30 = vpack.c.bf16 %v100_v25, %v98_v24  ;;  %v211_v42 = vld [vmem:[%s356_s3] sm:$0xff]   ;;  %v216_v48 = vunpack.c.l.bf16 %v218_v44  ;;  %v217_v49 = vunpack.c.h.bf16 %v218_v44 }
   0x9   :  { %167 = vmatpush.bf16.msrb.mxu0 %v119_v18  ;;  %224 = vmatpush.bf16.msra.mxu2 %v119_v18  ;;  %v212_v46 = vunpack.c.l.bf16 %v211_v42  ;;  %v213_v47 = vunpack.c.h.bf16 %v211_v42 }
   0xb   :  { %148 = vmatpush.bf16.msra.mxu1 %v118_v15  ;;  %220 = vmatpush.bf16.msra.mxu3 %v118_v15 }
   0xd   :  { %168 = vmatpush.bf16.msrb.mxu0 %v117_v27  ;;  %225 = vmatpush.bf16.msra.mxu2 %v117_v27 }
   0xf   :  { %149 = vmatpush.bf16.msra.mxu1 %v116_v26  ;;  %221 = vmatpush.bf16.msra.mxu3 %v116_v26 }
  0x11   :  { %169 = vmatpush.bf16.msrb.mxu0 %v115_v31  ;;  %226 = vmatpush.bf16.msra.mxu2 %v115_v31 }
  0x13   :  { %150 = vmatpush.bf16.msra.mxu1 %v114_v30  ;;  %222 = vmatpush.bf16.msra.mxu3 %v114_v30 }
  0x80   :  { %v49_v3 = vpop.f32.mrf.mxu0 }
  0x81   :  { %v50_v4 = vadd.f32 %v49_v3, %v27_v2 }
  0x83   :  { %v195_v5 = vmul.f32 -1.442695, %v50_v4 }
  0x85   :  { %227 = vpow2.f32 %v195_v5 }
  0x8b   :  { %v228_v17 = vpop.eup %227 }
  0x8c   :  { %v55_v19 = vadd.f32 1.0, %v228_v17 }
  0x8e   :  { %229 = vrcp.f32 %v55_v19  ;;  %v67_v35 = vand.u32 2147483648, %v55_v19  ;;  %v65_v37 = vand.u32 2147483647, %v55_v19  ;;  %vm61_vm2 = vweird.f32 %v55_v19 }
  0x90   :  { %v68_v39 = vor.u32 1.1754944e-38, %v67_v35  ;;  %vm66_vm4 = vcmp.eq.f32.partialorder %v65_v37, 8.507059e+37 }
  0x94   :  { %v230_v32 = vpop.eup %229 }
  0x95   :  { %v57_v33 = vmul.f32 %v230_v32, %v55_v19  ;;  %vm62_vm1 = vweird.f32 %v230_v32 }
  0x96   :  { %vm63_vm3 = vmor %vm61_vm2, %vm62_vm1 }
  0x97   :  { %v58_v34 = vsub.f32 1.0, %v57_v33 }
  0x99   :  { %v59_v36 = vmul.f32 %v230_v32, %v58_v34 }
  0x9b   :  { %v60_v38 = vadd.f32 %v230_v32, %v59_v36 }
  0x9d   :  { %v64_v40 = vsel %vm63_vm3, %v230_v32, %v60_v38 }
  0x9e   :  { %v69_v41 = vsel %vm66_vm4, %v68_v39, %v64_v40 }
  0x9f   :  { %v75_v43 = vpack.c.bf16 %v69_v41, %v69_v41 }
  0xa1   :  { %v77_v45 = vpack.i.b16 %v75_v43, %v75_v43 }
  0xa3   :  { %v79_v50 = vperm.slane %v77_v45, 0 }
  0xa5   :  { %v84_v51 = vunpack.c.l.bf16 %v79_v50 }
  0xa7   :  { %v85_v52 = vmul.f32 %v212_v46, %v84_v51  ;;  %v86_v53 = vmul.f32 %v213_v47, %v84_v51  ;;  %v87_v54 = vmul.f32 %v216_v48, %v84_v51  ;;  %v88_v55 = vmul.f32 %v217_v49, %v84_v51 }
  0xa9   :  { %v89_v56 = vpack.c.bf16 %v85_v52, %v85_v52  ;;  %v90_v57 = vpack.c.bf16 %v86_v53, %v86_v53  ;;  %v91_v58 = vpack.c.bf16 %v87_v54, %v87_v54  ;;  %v92_v59 = vpack.c.bf16 %v88_v55, %v88_v55 }
  0xab   :  { %94 = vst.msk [vmem:[#allocation2] sm:$0xf] %vm93_vm5, %v89_v56 }
  0xac   :  { %95 = vst.msk [vmem:[#allocation2 + $0x4] sm:$0xf] %vm93_vm5, %v90_v57 }
  0xad   :  { %96 = vst.msk [vmem:[#allocation2 + $0x8] sm:$0xf] %vm93_vm5, %v91_v58 }
  0xae   :  { %97 = vst.msk [vmem:[#allocation2 + $0xc] sm:$0xf] %vm93_vm5, %v92_v59 }
  0xb3   :  { %v208_v60 = vld [vmem:[#allocation2] sm:$0xff] }
  0xb4   :  { %204 = vmatmul.msk.bf16.vlgmr.msra.gmra.mxu1 %vm136_vm6, %v208_v60  ;;  %206 = vmatmul.msk.bf16.vlgmr.msrb.gmra.mxu0 %vm136_vm6, %v208_v60 }
  0xb5   :  { %v209_v61 = vld [vmem:[#allocation2 + $0x8] sm:$0xff] }
  0xb6   :  { %205 = vmatmul.msk.bf16.vlgmr.msra.gmra.mxu3 %vm136_vm6, %v209_v61  ;;  %207 = vmatmul.msk.bf16.vlgmr.msra.gmra.mxu2 %vm136_vm6, %v209_v61 }
 0x131   :  { %v152_v62 = vpop.f32.mrf.mxu1  ;;  %v171_v63 = vpop.f32.mrf.mxu0 }
 0x132   :  { %181 = vst [vmem:[%s357_s5] sm:$0xff] %v152_v62 }
 0x133   :  { %183 = vst.msk [vmem:[%s357_s5 + $0x8] sm:$0xff] %vm182_vm7, %v171_v63 }
 0x139   :  { %v157_v0 = vpop.f32.mrf.mxu3  ;;  %v176_v1 = vpop.f32.mrf.mxu2 }
 0x13a   :  { %186 = vst [vmem:[%s357_s5 + $0x20] sm:$0xff] %v157_v0  ;;  %v154_v2 = vpop.f32.mrf.mxu1  ;;  %v173_v3 = vpop.f32.mrf.mxu0 }
 0x13b   :  { %187 = vst.msk [vmem:[%s357_s5 + $0x28] sm:$0xff] %vm182_vm7, %v176_v1 }
 0x13c   :  { %184 = vst [vmem:[%s357_s5 + $0x10] sm:$0xff] %v154_v2 }
 0x13d   :  { %185 = vst.msk [vmem:[%s357_s5 + $0x18] sm:$0xff] %vm182_vm7, %v173_v3 }
 0x141   :  { %v159_v4 = vpop.f32.mrf.mxu3  ;;  %v178_v5 = vpop.f32.mrf.mxu2 }
 0x142   :  { %188 = vst [vmem:[%s357_s5 + $0x30] sm:$0xff] %v159_v4 }
 0x143   :  { %189 = vst.msk [vmem:[%s357_s5 + $0x38] sm:$0xff] %vm182_vm7, %v178_v5 }

</bundles_post_ra>
